<compile_context>
chip_gen: v5e
topology: v5e:2x2
jax: 0.10.0
libtpu: 0.0.40
codegen_flags: <defaults>
</compile_context>

<pallas_src>
import jax
import jax.numpy as jnp
from jax import lax
from jax.experimental import pallas as pl
from jax.experimental.pallas import tpu as pltpu

GAMMA = 2.0  # FocalLoss.__init__ default (alpha=None, reduction='mean')


def _round_up(x, m):
    return ((x + m - 1) // m) * m


def _vmem_capacity_bytes():
    try:
        return int(pltpu.get_tpu_info().vmem_capacity_bytes)
    except Exception:
        return 64 * 1024 * 1024  # conservative fallback (v7x per-TC VMEM)


def _sublane(itemsize):
    # Packed sublane granularity: f32 -> 8, bf16 -> 16, int8/fp8 -> 32.
    return max(8, 32 // max(int(itemsize), 1))


def _pick_tile_n(n, c, itemsize):
    """Row tile sized so the per-step logits DMA is multi-MiB while the
    double-buffered blocks stay well within the chip's VMEM."""
    sub = _sublane(itemsize)
    cap = _vmem_capacity_bytes()
    # ~4 MiB per logits buffer (x2 double-buffered + intermediates stays
    # comfortably inside 64 MiB on v7x, and well inside 128 MiB on v5e/v6e).
    budget_per_buf = min(4 * 1024 * 1024, cap // 16)
    max_rows = max(sub, budget_per_buf // (max(c, 1) * itemsize))
    tile = min(max_rows, _round_up(n, sub))
    return max(sub, (tile // sub) * sub)


def _make_focal_loss_kernel(n_rows, tile_n, num_tiles):
    has_remainder = (n_rows % tile_n) != 0

    def kernel(logits_ref, targets_ref, out_ref):
        i = pl.program_id(0)

        logits = logits_ref[...].astype(jnp.float32)     # (tile_n, C)
        tgt = targets_ref[...]                           # (tile_n, 1) int32
        tn, c = logits.shape

        # Fused one-hot: class-iota vs target column.
        col = lax.broadcasted_iota(jnp.int32, (tn, c), 1)
        hit = col == tgt                                 # (tile_n, C) bool

        # Numerically stable softmax pieces.
        m = jnp.max(logits, axis=-1, keepdims=True)      # (tile_n, 1)
        z = logits - m
        denom = jnp.sum(jnp.exp(z), axis=-1, keepdims=True)
        z_t = jnp.sum(jnp.where(hit, z, 0.0), axis=-1, keepdims=True)

        ce = jnp.log(denom) - z_t                        # logsumexp - logit_target
        pt = jnp.exp(z_t) / denom                        # == exp(-ce); per-row EUP exp
        w = 1.0 - pt
        focal = w * w * ce                               # gamma == 2.0 -> explicit square

        def write(vec):
            out_ref[...] = jnp.broadcast_to(jnp.sum(vec), (1, 8, 128))

        if has_remainder:
            # Row masking only on the final (partial) tile.
            @pl.when(i == num_tiles - 1)
            def _():
                row = lax.broadcasted_iota(jnp.int32, (tn, 1), 0) + i * tile_n
                write(jnp.where(row < n_rows, focal, 0.0))

            @pl.when(i != num_tiles - 1)
            def _():
                write(focal)
        else:
            write(focal)

    return kernel


def focal_loss(logits, targets, tile_n=None):
    """logits: (N, C) float, targets: (N,) int class indices -> scalar f32 mean focal loss."""
    n, c = logits.shape
    targets2d = targets.reshape(n, 1).astype(jnp.int32)
    if tile_n is None:
        tile_n = _pick_tile_n(n, c, jnp.dtype(logits.dtype).itemsize)
    num_tiles = pl.cdiv(n, tile_n)
    cap = _vmem_capacity_bytes()

    partials = pl.pallas_call(
        _make_focal_loss_kernel(n, tile_n, num_tiles),
        out_shape=jax.ShapeDtypeStruct((num_tiles, 8, 128), jnp.float32),
        grid_spec=pltpu.PrefetchScalarGridSpec(
            num_scalar_prefetch=0,
            grid=(num_tiles,),
            in_specs=[
                pl.BlockSpec((tile_n, c), lambda i: (i, 0)),
                pl.BlockSpec((tile_n, 1), lambda i: (i, 0)),
            ],
            out_specs=pl.BlockSpec((1, 8, 128), lambda i: (i, 0, 0)),
        ),
        compiler_params=pltpu.CompilerParams(
            dimension_semantics=("parallel",),
            vmem_limit_bytes=int(min(cap * 3 // 4, 96 * 1024 * 1024)),
        ),
    )(logits, targets2d)

    # Tiny final reduction over per-tile partials + mean divide stay in XLA.
    return jnp.sum(partials[:, 0, 0]) / jnp.float32(n)


def focal_loss_ref(logits, targets):
    """Pure-JAX reference (mirrors F.cross_entropy + focal weighting)."""
    logp = jax.nn.log_softmax(logits.astype(jnp.float32), axis=-1)
    ce = -jnp.take_along_axis(logp, targets[:, None].astype(jnp.int32), axis=-1)[:, 0]
    pt = jnp.exp(-ce)
    return jnp.mean((1.0 - pt) ** GAMMA * ce)


if __name__ == "__main__":
    key = jax.random.PRNGKey(0)
    k1, k2, k3, k4, k5, k6 = jax.random.split(key, 6)

    # Case 1: small shape consistent with the module (batch=8, classes=32).
    n1, c1 = 8, 32
    logits1 = jax.random.normal(k1, (n1, c1), dtype=jnp.float32)
    targets1 = jax.random.randint(k2, (n1,), 0, c1, dtype=jnp.int32)
    out1 = jax.block_until_ready(focal_loss(logits1, targets1))
    ref1 = jax.block_until_ready(focal_loss_ref(logits1, targets1))
    assert jnp.allclose(out1, ref1, rtol=1e-5, atol=1e-5), (out1, ref1)

    # Case 2: multi-tile grid + last-partial-tile masking + per-tile partial outputs.
    n2, c2 = 20, 32
    logits2 = jax.random.normal(k3, (n2, c2), dtype=jnp.float32)
    targets2 = jax.random.randint(k4, (n2,), 0, c2, dtype=jnp.int32)
    out2 = jax.block_until_ready(focal_loss(logits2, targets2, tile_n=8))
    ref2 = jax.block_until_ready(focal_loss_ref(logits2, targets2))
    assert jnp.allclose(out2, ref2, rtol=1e-5, atol=1e-5), (out2, ref2)

    # Case 3: bf16 inputs exercise the sublane-16 tile rounding / in-kernel upcast.
    n3, c3 = 16, 32
    logits3 = jax.random.normal(k5, (n3, c3), dtype=jnp.float32).astype(jnp.bfloat16)
    targets3 = jax.random.randint(k6, (n3,), 0, c3, dtype=jnp.int32)
    out3 = jax.block_until_ready(focal_loss(logits3, targets3))
    ref3 = jax.block_until_ready(focal_loss_ref(logits3, targets3))
    assert jnp.allclose(out3, ref3, rtol=1e-4, atol=1e-4), (out3, ref3)

    print("KERNEL_OK")
</pallas_src>

<mosaic_0001>
module attributes {stable_mosaic.version = 11 : i64} {
  func.func @kernel(%arg0: i32, %arg1: memref<8x32xf32, #tpu.memory_space<vmem>>, %arg2: memref<8x1xi32, #tpu.memory_space<vmem>>, %arg3: memref<1x8x128xf32, #tpu.memory_space<vmem>>) attributes {dimension_semantics = [#tpu.dimension_semantics<parallel>], iteration_bounds = array<i64: 1>, scalar_prefetch = 0 : i64, scratch_operands = 0 : i64, tpu.core_type = #tpu.core_type<tc>, window_params = [{transform_indices = @transform_0, window_bounds = array<i64: 8, 32>}, {transform_indices = @transform_1, window_bounds = array<i64: 8, 1>}, {transform_indices = @transform_2, window_bounds = array<i64: 1, 8, 128>}]} {
    %c0 = arith.constant 0 : index
    %c0_0 = arith.constant 0 : index
    %0 = vector.load %arg1[%c0, %c0_0] : memref<8x32xf32, #tpu.memory_space<vmem>>, vector<8x32xf32>
    %c0_1 = arith.constant 0 : index
    %c0_2 = arith.constant 0 : index
    %1 = vector.load %arg2[%c0_1, %c0_2] : memref<8x1xi32, #tpu.memory_space<vmem>>, vector<8x1xi32>
    %2 = tpu.iota {dimensions = array<i32: 1>} : vector<8x32xi32>
    %3 = vector.broadcast %1 : vector<8x1xi32> to vector<8x32xi32>
    %4 = arith.cmpi eq, %2, %3 : vector<8x32xi32>
    %cst = arith.constant dense<0xFF800000> : vector<8xf32>
    %5 = vector.multi_reduction <maximumf>, %0, %cst [1] : vector<8x32xf32> to vector<8xf32>
    %6 = vector.shape_cast %5 : vector<8xf32> to vector<8x1xf32>
    %7 = vector.broadcast %6 : vector<8x1xf32> to vector<8x32xf32>
    %8 = arith.subf %0, %7 : vector<8x32xf32>
    %9 = math.exp %8 : vector<8x32xf32>
    %cst_3 = arith.constant dense<0.000000e+00> : vector<8xf32>
    %10 = vector.multi_reduction <add>, %9, %cst_3 [1] : vector<8x32xf32> to vector<8xf32>
    %11 = vector.shape_cast %10 : vector<8xf32> to vector<8x1xf32>
    %cst_4 = arith.constant 0.000000e+00 : f32
    %12 = vector.broadcast %cst_4 : f32 to vector<8x32xf32>
    %13 = arith.select %4, %8, %12 : vector<8x32xi1>, vector<8x32xf32>
    %cst_5 = arith.constant dense<0.000000e+00> : vector<8xf32>
    %14 = vector.multi_reduction <add>, %13, %cst_5 [1] : vector<8x32xf32> to vector<8xf32>
    %15 = vector.shape_cast %14 : vector<8xf32> to vector<8x1xf32>
    %16 = math.log %11 : vector<8x1xf32>
    %17 = arith.subf %16, %15 : vector<8x1xf32>
    %18 = math.exp %15 : vector<8x1xf32>
    %19 = arith.divf %18, %11 : vector<8x1xf32>
    %cst_6 = arith.constant 1.000000e+00 : f32
    %20 = vector.broadcast %cst_6 : f32 to vector<8x1xf32>
    %21 = arith.subf %20, %19 : vector<8x1xf32>
    %22 = arith.mulf %21, %21 : vector<8x1xf32>
    %23 = arith.mulf %22, %17 : vector<8x1xf32>
    %24 = vector.shape_cast %23 : vector<8x1xf32> to vector<1x8x1xf32>
    %cst_7 = arith.constant dense<0.000000e+00> : vector<1xf32>
    %25 = vector.multi_reduction <add>, %24, %cst_7 [1, 2] : vector<1x8x1xf32> to vector<1xf32>
    %26 = vector.shape_cast %25 : vector<1xf32> to vector<1x1x1xf32>
    %27 = vector.extract %26[0, 0, 0] : f32 from vector<1x1x1xf32>
    %28 = vector.broadcast %27 : f32 to vector<1x8x128xf32>
    %c0_8 = arith.constant 0 : index
    %c0_9 = arith.constant 0 : index
    %c0_10 = arith.constant 0 : index
    %29 = vector.load %arg3[%c0_8, %c0_9, %c0_10] : memref<1x8x128xf32, #tpu.memory_space<vmem>>, vector<1x8x128xf32>
    tpu.vector_store %arg3[%c0_8, %c0_9, %c0_10], %28 {strides = array<i32>} : memref<1x8x128xf32, #tpu.memory_space<vmem>>, vector<1x8x128xf32>,
    return
  }
  func.func @transform_0(%arg0: i32) -> (i32, i32) {
    %c0_i32 = arith.constant 0 : i32
    %c0_i32_0 = arith.constant 0 : i32
    return %arg0, %c0_i32 : i32, i32
  }
  func.func @transform_1(%arg0: i32) -> (i32, i32) {
    %c0_i32 = arith.constant 0 : i32
    %c0_i32_0 = arith.constant 0 : i32
    return %arg0, %c0_i32 : i32, i32
  }
  func.func @transform_2(%arg0: i32) -> (i32, i32, i32) {
    %c0_i32 = arith.constant 0 : i32
    %c0_i32_0 = arith.constant 0 : i32
    %c0_i32_1 = arith.constant 0 : i32
    return %arg0, %c0_i32, %c0_i32_0 : i32, i32, i32
  }
}

</mosaic_0001>

<bundles_post_ra>
// kernel: tpu_custom_call.1
= control target key start
LH: loop header
LB: loop body
LE: loop exit
PB: predicated region body
PF: predicated region fallthrough
CT: control target
= control target key end

     0   :  { %vm20_vm0 = vcmask 261120   ;;  %s154_s0 = inlined_call_operand.vmem [shape: f32[8,32], index: 0, kind: input, shape index: {}]   ;;  %s155_s1 = inlined_call_operand.vmem [shape: s32[8,1], index: 1, kind: input, shape index: {}]   ;;  %s156_s2 = inlined_call_operand.hbm [shape: f32[1,8,128], index: 2, kind: output, shape index: {}]  }
   0x1   :  { %v12_v0 = vld [vmem:[%s154_s0] sm:$0xff] }
   0x2   :  { %7 = vsyncpa [#allocation3], 0  ;;  %v21_v1 = vsel %vm20_vm0, %v12_v0, -inf  ;;  %v125_v2 = vmov 0   ;;  %v13_v3 = vld [vmem:[%s155_s1] sm:$0xff]  ;;  %v14_v9 = vlaneseq  ;;  %vm57_vm6 = vcmask 7168  }
   0x3   :  { %90 = vset.pattern.permute.xlu0 %v125_v2  ;;  %s126_s0 = smov [#allocation2]   ;;  %s77_s15 = sshll.u32 %s156_s2, 4  ;;  %s78_s15 = int_to_ptr.hbm [resolvable:$true] %s77_s15 }
   0x4   :  { %22 = vmax.xlane.f32.xlu0 %v21_v1  ;;  %v15_v10 = vand.u32 127, %v14_v9  ;;  %s75_s1 = sshll.u32 %s126_s0, 4  ;;  %s76_s1 = int_to_ptr.vmem [resolvable:$true] %s75_s1 }
  0x18   :  { %17 = vperm.xlu0 %90, %v13_v3  }
  0x77   :  { %v23_v4 = vpop.xlane.xlu0 %22 }
  0x78   :  { %v24_v5 = vsub.f32 %v12_v0, %v23_v4 }
  0x7a   :  { %v25_v6 = vmul.f32 1.442695, %v24_v5 }
  0x7c   :  { %91 = vpow2.f32 %v25_v6 }
  0x82   :  { %v92_v7 = vpop.eup %91 }
  0x83   :  { %v27_v8 = vsel %vm20_vm0, %v92_v7, 0.0 }
  0x84   :  { %28 = vadd.xlane.f32.xlu1 %v27_v8 }
  0x8a   :  { %v18_v11 = vpop.permute.xlu0 %17 }
  0x8b   :  { %vm19_vm1 = vcmp.eq.s32.totalorder %v15_v10, %v18_v11 }
  0x8c   :  { %v30_v12 = vsel %vm19_vm1, %v24_v5, 0.0 }
  0x8d   :  { %v31_v13 = vsel %vm20_vm0, %v30_v12, 0.0 }
  0x8e   :  { %32 = vadd.xlane.f32.xlu1 %v31_v13 }
  0xf7   :  { %v29_v14 = vpop.xlane.xlu1 %28 }
  0xf8   :  { %93 = vrcp.f32 %v29_v14  ;;  %v50_v21 = vand.u32 2147483648, %v29_v14  ;;  %vm44_vm3 = vweird.f32 %v29_v14  ;;  %v48_v23 = vand.u32 2147483647, %v29_v14 }
  0xf9   :  { %95 = vlog2.f32 %v29_v14 }
  0xfa   :  { %v51_v26 = vor.u32 1.1754944e-38, %v50_v21  ;;  %vm49_vm5 = vcmp.eq.f32.partialorder %v48_v23, 8.507059e+37 }
  0xfe   :  { %v94_v15 = vpop.eup %93 }
  0xff   :  { %v40_v16 = vmul.f32 %v94_v15, %v29_v14  ;;  %vm45_vm2 = vweird.f32 %v94_v15  ;;  %v96_v25 = vpop.eup %95 }
 0x100   :  { %vm46_vm4 = vmor %vm44_vm3, %vm45_vm2  ;;  %v35_v29 = vmul.f32 0.6931472, %v96_v25 }
 0x101   :  { %v41_v17 = vsub.f32 1.0, %v40_v16  ;;  %v33_v18 = vpop.xlane.xlu1 %32 }
 0x102   :  { %v37_v19 = vmul.f32 1.442695, %v33_v18  ;;  %v36_v32 = vsub.f32 %v35_v29, %v33_v18 }
 0x103   :  { %v42_v20 = vmul.f32 %v94_v15, %v41_v17 }
 0x104   :  { %97 = vpow2.f32 %v37_v19 }
 0x105   :  { %v43_v22 = vadd.f32 %v94_v15, %v42_v20 }
 0x107   :  { %v47_v24 = vsel %vm46_vm4, %v94_v15, %v43_v22 }
 0x108   :  { %v52_v28 = vsel %vm49_vm5, %v51_v26, %v47_v24 }
 0x10a   :  { %v98_v27 = vpop.eup %97 }
 0x10b   :  { %v53_v30 = vmul.f32 %v98_v27, %v52_v28 }
 0x10d   :  { %v54_v31 = vsub.f32 1.0, %v53_v30 }
 0x10f   :  { %v55_v33 = vmul.f32 %v54_v31, %v54_v31 }
 0x111   :  { %v56_v34 = vmul.f32 %v55_v33, %v36_v32 }
 0x113   :  { %v58_v35 = vsel %vm57_vm6, %v56_v34, 0.0 }
 0x114   :  { %59 = vadd.xlane.f32.xlu2 %v58_v35 }
 0x187   :  { %v60_v36 = vpop.xlane.xlu2 %59 }
 0x188   :  { %v61_v37 = vrot.slane %v60_v36, 4 }
 0x18a   :  { %v62_v38 = vadd.f32 %v61_v37, %v60_v36 }
 0x18c   :  { %v63_v39 = vrot.slane %v62_v38, 2 }
 0x18e   :  { %v64_v40 = vadd.f32 %v63_v39, %v62_v38 }
 0x190   :  { %v65_v41 = vrot.slane %v64_v40, 1 }
 0x192   :  { %v66_v42 = vadd.f32 %v65_v41, %v64_v40 }
 0x194   :  { %86 = vpush %v66_v42 }
 0x1c5   :  { %s87_s16 = spop %86 }
 0x1c6   :  { %v68_v43 = vstv %s87_s16 }
 0x1c7   :  { %69 = vst [vmem:[#allocation2] sm:$0xff] %v68_v43 }
 0x1c8   :  { %80 = dma.vmem_to_hbm [thread:$0]  %s76_s1, 128, %s78_s15, [#allocation3]  }
 0x1c9   :  { %123 = dma.done.wait [#allocation3], 128  }
 0x1ca   :  { %124 = vsyncadd [#allocation3], 4294967168 }
 0x1cb   :  { %85 = vsyncpa [#allocation3], 1 }

</bundles_post_ra>
